<compile_context>
chip_gen: v7x
topology: tpu7x:2x2x1
jax: 0.10.0
libtpu: 0.0.40
codegen_flags: <defaults>
</compile_context>

<pallas_src>
import numpy as np
import jax
import jax.numpy as jnp
from jax.experimental import pallas as pl
from jax.experimental.pallas import tpu as pltpu


def _point_feature_kernel(net_ref, w1_ref, b1_ref, w2_ref, b2_ref, w3_ref,
                          out_ref):
    """Per-point conv stack (3->64->128->1024) + running max over point tiles."""
    n = pl.program_id(1)
    Bt, Nt, _ = net_ref.shape

    # Output block is resident across the point-tile axis (index map ignores n)
    # and doubles as the running-max accumulator.
    @pl.when(n == 0)
    def _():
        out_ref[...] = jnp.full(out_ref.shape, -jnp.inf, dtype=out_ref.dtype)

    # Fold the Bt batches into one big M dimension for the conv stack.
    x = net_ref[...].reshape(Bt * Nt, 3)                       # [M, 3] f32

    # Layer 1 (Conv1d 3->64, k=1) as VPU broadcast FMAs: a K=3 MXU matmul would
    # waste the systolic array and force a lane-sparse relayout.
    # TODO(synk): if XLU pressure ever shows up, switch to a channel-padded
    # [., ., 8] input layout instead of the three lane-slice broadcasts.
    h = (x[:, 0:1] * w1_ref[0:1, :]
         + x[:, 1:2] * w1_ref[1:2, :]
         + x[:, 2:3] * w1_ref[2:3, :]
         + b1_ref[...])
    h = jnp.maximum(h, 0.0)                                    # [M, 64] f32

    # Layer 2 (64 -> 128): bf16 operands on the MXU, f32 accumulation (an f32
    # matmul costs ~3x the MXU passes on bf16-native MXUs).
    h = jnp.maximum(
        jnp.dot(h.astype(jnp.bfloat16), w2_ref[...],
                preferred_element_type=jnp.float32) + b2_ref[...],
        0.0)                                                   # [M, 128] f32

    # Layer 3 (128 -> 1024): dominant matmul — bf16 operands, f32 accumulation.
    # Bias-add and ReLU are deferred past the max-pool (applied in the wrapper):
    # mathematically exact and removes two VPU passes over [M, 1024].
    h = jnp.dot(h.astype(jnp.bfloat16), w3_ref[...],
                preferred_element_type=jnp.float32)            # [M, 1024] f32

    # Per-batch max over this point tile, folded into the running max.
    # (Reshape before the max so batches folded into M are not mixed.)
    tile_max = jnp.max(h.reshape(Bt, Nt, 1024), axis=1)        # [Bt, 1024]
    out_ref[...] = jnp.maximum(out_ref[...], tile_max[:, None, :])


def _pick_tiling(B, N):
    """Per-generation tile sizes (v5e/v6e: 128 MiB VMEM; v7x: 64 MiB per TC)."""
    try:
        vmem_bytes = int(pltpu.get_tpu_info().vmem_capacity_bytes)
    except Exception:
        vmem_bytes = 64 * 1024 * 1024  # conservative: assume smallest (v7x) VMEM
    if vmem_bytes >= 128 * 1024 * 1024:          # v5e / v6e
        nt_cap, vmem_limit = 512, 64 * 1024 * 1024
    else:                                        # v7x: 64 MiB per TensorCore
        nt_cap, vmem_limit = 256, 32 * 1024 * 1024
    # Batch tile <= 8; for small B split into two batch blocks so the
    # "parallel" grid axis has >= 2 programs and both v7x TensorCores get work.
    if B <= 1:
        bt = 1
    elif B <= 16:
        bt = (B + 1) // 2
    else:
        bt = 8
    nt = ((N + 7) // 8) * 8 if N <= nt_cap else nt_cap
    return bt, nt, vmem_limit


def transform_net_forward(net, params):
    """Forward pass of `transform_net`. net: [B, N, 3] f32 -> [B, N, 3] f32."""
    (w1, b1, w2, b2, w3, b3, w4, b4, w5, b5, w6, b6) = params
    B, N, C = net.shape
    assert C == 3

    Bt, Nt, vmem_limit = _pick_tiling(B, N)
    B_pad = ((B + Bt - 1) // Bt) * Bt
    N_pad = ((N + Nt - 1) // Nt) * Nt

    # Pad by edge replication: repeated points/batches never change the max
    # (so no in-kernel masking is needed); padded batches are sliced off below.
    net_p = net
    if (B_pad, N_pad) != (B, N):
        net_p = jnp.pad(net, ((0, B_pad - B), (0, N_pad - N), (0, 0)), mode="edge")

    grid = (B_pad // Bt, N_pad // Nt)

    kernel_weights = (w1, b1, w2, b2, w3)
    in_specs = [pl.BlockSpec((Bt, Nt, 3), lambda b, n: (b, n, 0))]
    for p in kernel_weights:
        # Constant index map: weights/biases are resident for the whole grid.
        # After hoisting the FC head these total ~0.3 MiB, so the default
        # double-buffering of these constants is negligible.
        in_specs.append(pl.BlockSpec(p.shape, lambda b, n: (0, 0)))

    # 3-D output: last two block dims (1, 1024) equal the full array dims for
    # any Bt, and the last dim is lane-dense (multiple of 128).
    out_specs = pl.BlockSpec((Bt, 1, 1024), lambda b, n: (b, 0, 0))

    flops = 2 * B_pad * N_pad * (3 * 64 + 64 * 128 + 128 * 1024)
    bytes_accessed = (int(net_p.size) * net_p.dtype.itemsize
                      + sum(int(p.size) * p.dtype.itemsize for p in kernel_weights)
                      + B_pad * 1024 * 4)

    gmax = pl.pallas_call(
        _point_feature_kernel,
        out_shape=jax.ShapeDtypeStruct((B_pad, 1, 1024), jnp.float32),
        grid=grid,
        in_specs=in_specs,
        out_specs=out_specs,
        compiler_params=pltpu.CompilerParams(
            dimension_semantics=("parallel", "arbitrary"),
            vmem_limit_bytes=vmem_limit),
        cost_estimate=pl.CostEstimate(
            flops=int(flops), transcendentals=0,
            bytes_accessed=int(bytes_accessed)),
    )(net_p, *kernel_weights)

    # Deferred layer-3 bias + ReLU (exact past the max-pool), then the tiny FC
    # head (1024->512->256->9) as one M=B matmul chain in plain XLA; the extra
    # HBM round-trip is only 4 KiB per batch.
    g = jnp.maximum(gmax[:B, 0, :] + b3, 0.0)                  # [B, 1024]
    f = jnp.maximum(jnp.dot(g.astype(jnp.bfloat16), w4,
                            preferred_element_type=jnp.float32) + b4, 0.0)
    f = jnp.maximum(jnp.dot(f.astype(jnp.bfloat16), w5,
                            preferred_element_type=jnp.float32) + b5, 0.0)
    t = jnp.dot(f, w6) + b6                                    # b6 includes identity
    T = t.reshape(B, 3, 3)

    # Apply the learned per-batch 3x3 transform: out = net @ T_b.
    return jnp.matmul(net, T)


# ---------------------------------------------------------------------------
# Deterministic parameter construction (synthetic; no checkpoint load).
# ---------------------------------------------------------------------------
def _init_linear(key, fan_in, fan_out):
    kw, kb = jax.random.split(key)
    bound = 1.0 / np.sqrt(fan_in)
    w = jax.random.uniform(kw, (fan_in, fan_out), jnp.float32, -bound, bound)
    b = jax.random.uniform(kb, (fan_out,), jnp.float32, -bound, bound)
    return w, b


def _init_bn(key, c):
    k1, k2, k3, k4 = jax.random.split(key, 4)
    gamma = 1.0 + 0.1 * jax.random.uniform(k1, (c,), jnp.float32, -1.0, 1.0)
    beta = 0.1 * jax.random.uniform(k2, (c,), jnp.float32, -1.0, 1.0)
    mean = 0.1 * jax.random.uniform(k3, (c,), jnp.float32, -1.0, 1.0)
    var = 1.0 + 0.1 * jax.random.uniform(k4, (c,), jnp.float32, 0.0, 1.0)
    return gamma, beta, mean, var


def _fold_bn(w, b, bn, eps=1e-5):
    gamma, beta, mean, var = bn
    scale = gamma / jnp.sqrt(var + eps)
    wf = w * scale[None, :]
    bf = b * scale + beta - mean * scale
    return wf, bf


def make_params(seed=0):
    key = jax.random.PRNGKey(seed)
    keys = jax.random.split(key, 11)
    # conv/fc layers: weight layout [in_ch, out_ch] (pointwise conv == linear).
    w1, b1 = _init_linear(keys[0], 3, 64)
    w2, b2 = _init_linear(keys[1], 64, 128)
    w3, b3 = _init_linear(keys[2], 128, 1024)
    w4, b4 = _init_linear(keys[3], 1024, 512)
    w5, b5 = _init_linear(keys[4], 512, 256)
    w6, b6 = _init_linear(keys[5], 256, 9)
    bn1 = _init_bn(keys[6], 64)
    bn2 = _init_bn(keys[7], 128)
    bn3 = _init_bn(keys[8], 1024)
    bn4 = _init_bn(keys[9], 512)
    bn5 = _init_bn(keys[10], 256)

    w1f, b1f = _fold_bn(w1, b1, bn1)
    w2f, b2f = _fold_bn(w2, b2, bn2)
    w3f, b3f = _fold_bn(w3, b3, bn3)
    w4f, b4f = _fold_bn(w4, b4, bn4)
    w5f, b5f = _fold_bn(w5, b5, bn5)
    # fc3 has no BN; fold the added identity matrix into its bias.
    iden = jnp.array([1, 0, 0, 0, 1, 0, 0, 0, 1], jnp.float32)
    b6f = b6 + iden

    # Heavy weights (w2..w5) stored in bf16 (half the HBM/VMEM traffic, native
    # MXU rate); w1/w6 and all biases stay f32; matmuls accumulate in f32.
    params = (w1f, b1f[None, :],
              w2f.astype(jnp.bfloat16), b2f[None, :],
              w3f.astype(jnp.bfloat16), b3f[None, :],
              w4f.astype(jnp.bfloat16), b4f[None, :],
              w5f.astype(jnp.bfloat16), b5f[None, :],
              w6, b6f[None, :])
    return params


def reference_forward(net, params):
    """Pure-JAX reference using the same bf16-weight / f32-accumulate recipe
    (bias + ReLU applied before the max-pool, i.e. the module's literal order)."""
    (w1, b1, w2, b2, w3, b3, w4, b4, w5, b5, w6, b6) = params
    B, N, _ = net.shape
    x = net.reshape(B * N, 3)
    h = jax.nn.relu(jnp.dot(x, w1) + b1)
    h = jax.nn.relu(jnp.dot(h.astype(jnp.bfloat16), w2,
                            preferred_element_type=jnp.float32) + b2)
    h = jax.nn.relu(jnp.dot(h.astype(jnp.bfloat16), w3,
                            preferred_element_type=jnp.float32) + b3)
    g = jnp.max(h.reshape(B, N, 1024), axis=1)                 # [B, 1024]
    f = jax.nn.relu(jnp.dot(g.astype(jnp.bfloat16), w4,
                            preferred_element_type=jnp.float32) + b4)
    f = jax.nn.relu(jnp.dot(f.astype(jnp.bfloat16), w5,
                            preferred_element_type=jnp.float32) + b5)
    t = (jnp.dot(f, w6) + b6).reshape(B, 3, 3)
    return jnp.matmul(net, t)


if __name__ == "__main__":
    B, N = 2, 16  # batch=2, num_point=16 (small); channels fixed at 3 by the module
    key = jax.random.PRNGKey(0)
    net = jax.random.normal(key, (B, N, 3), jnp.float32)

    params = make_params(seed=0)

    out = transform_net_forward(net, params)
    out = jax.block_until_ready(out)

    ref = reference_forward(net, params)
    assert out.shape == (B, N, 3)
    np.testing.assert_allclose(np.asarray(out), np.asarray(ref), rtol=1e-3, atol=1e-3)

    print("KERNEL_OK")
</pallas_src>

<mosaic_0001>
module attributes {stable_mosaic.version = 11 : i64} {
  func.func @_point_feature_kernel(%arg0: i32, %arg1: i32, %arg2: memref<1x16x3xf32, #tpu.memory_space<vmem>>, %arg3: memref<3x64xf32, #tpu.memory_space<vmem>>, %arg4: memref<1x64xf32, #tpu.memory_space<vmem>>, %arg5: memref<64x128xbf16, #tpu.memory_space<vmem>>, %arg6: memref<1x128xf32, #tpu.memory_space<vmem>>, %arg7: memref<128x1024xbf16, #tpu.memory_space<vmem>>, %arg8: memref<1x1x1024xf32, #tpu.memory_space<vmem>>) attributes {dimension_semantics = [#tpu.dimension_semantics<parallel>, #tpu.dimension_semantics<arbitrary>], iteration_bounds = array<i64: 2, 1>, scalar_prefetch = 0 : i64, scratch_operands = 0 : i64, tpu.core_type = #tpu.core_type<tc>, window_params = [{transform_indices = @transform_0, window_bounds = array<i64: 1, 16, 3>}, {pipeline_mode = #tpu.pipeline_mode<synchronous>, transform_indices = @transform_1, window_bounds = array<i64: 3, 64>}, {pipeline_mode = #tpu.pipeline_mode<synchronous>, transform_indices = @transform_2, window_bounds = array<i64: 1, 64>}, {pipeline_mode = #tpu.pipeline_mode<synchronous>, transform_indices = @transform_3, window_bounds = array<i64: 64, 128>}, {pipeline_mode = #tpu.pipeline_mode<synchronous>, transform_indices = @transform_4, window_bounds = array<i64: 1, 128>}, {pipeline_mode = #tpu.pipeline_mode<synchronous>, transform_indices = @transform_5, window_bounds = array<i64: 128, 1024>}, {transform_indices = @transform_6, window_bounds = array<i64: 1, 1, 1024>}]} {
    %c0_i32 = arith.constant 0 : i32
    %0 = arith.cmpi eq, %arg1, %c0_i32 : i32
    %1 = arith.extui %0 : i1 to i32
    %c0_i32_0 = arith.constant 0 : i32
    %2 = arith.cmpi ne, %1, %c0_i32_0 : i32
    scf.if %2 {
      %cst_25 = arith.constant 0xFF800000 : f32
      %44 = vector.broadcast %cst_25 : f32 to vector<1x1x1024xf32>
      %c0_26 = arith.constant 0 : index
      %c0_27 = arith.constant 0 : index
      %c0_28 = arith.constant 0 : index
      %45 = vector.load %arg8[%c0_26, %c0_27, %c0_28] : memref<1x1x1024xf32, #tpu.memory_space<vmem>>, vector<1x1x1024xf32>
      tpu.vector_store %arg8[%c0_26, %c0_27, %c0_28], %44 {strides = array<i32>} : memref<1x1x1024xf32, #tpu.memory_space<vmem>>, vector<1x1x1024xf32>,
    } else {
    }
    %c0 = arith.constant 0 : index
    %c0_1 = arith.constant 0 : index
    %c0_2 = arith.constant 0 : index
    %3 = vector.load %arg2[%c0, %c0_1, %c0_2] : memref<1x16x3xf32, #tpu.memory_space<vmem>>, vector<1x16x3xf32>
    %4 = vector.shape_cast %3 : vector<1x16x3xf32> to vector<16x3xf32>
    %5 = vector.extract_strided_slice %4 {offsets = [0, 0], sizes = [16, 1], strides = [1, 1]} : vector<16x3xf32> to vector<16x1xf32>
    %c0_3 = arith.constant 0 : index
    %c0_4 = arith.constant 0 : index
    %6 = vector.load %arg3[%c0_3, %c0_4] : memref<3x64xf32, #tpu.memory_space<vmem>>, vector<1x64xf32>
    %7 = vector.broadcast %5 : vector<16x1xf32> to vector<16x64xf32>
    %8 = vector.broadcast %6 : vector<1x64xf32> to vector<16x64xf32>
    %9 = arith.mulf %7, %8 : vector<16x64xf32>
    %10 = vector.extract_strided_slice %4 {offsets = [0, 1], sizes = [16, 1], strides = [1, 1]} : vector<16x3xf32> to vector<16x1xf32>
    %c1 = arith.constant 1 : index
    %c0_5 = arith.constant 0 : index
    %11 = vector.load %arg3[%c1, %c0_5] : memref<3x64xf32, #tpu.memory_space<vmem>>, vector<1x64xf32>
    %12 = vector.broadcast %10 : vector<16x1xf32> to vector<16x64xf32>
    %13 = vector.broadcast %11 : vector<1x64xf32> to vector<16x64xf32>
    %14 = arith.mulf %12, %13 : vector<16x64xf32>
    %15 = arith.addf %9, %14 : vector<16x64xf32>
    %16 = vector.extract_strided_slice %4 {offsets = [0, 2], sizes = [16, 1], strides = [1, 1]} : vector<16x3xf32> to vector<16x1xf32>
    %c2 = arith.constant 2 : index
    %c0_6 = arith.constant 0 : index
    %17 = vector.load %arg3[%c2, %c0_6] : memref<3x64xf32, #tpu.memory_space<vmem>>, vector<1x64xf32>
    %18 = vector.broadcast %16 : vector<16x1xf32> to vector<16x64xf32>
    %19 = vector.broadcast %17 : vector<1x64xf32> to vector<16x64xf32>
    %20 = arith.mulf %18, %19 : vector<16x64xf32>
    %21 = arith.addf %15, %20 : vector<16x64xf32>
    %c0_7 = arith.constant 0 : index
    %c0_8 = arith.constant 0 : index
    %22 = vector.load %arg4[%c0_7, %c0_8] : memref<1x64xf32, #tpu.memory_space<vmem>>, vector<1x64xf32>
    %23 = vector.broadcast %22 : vector<1x64xf32> to vector<16x64xf32>
    %24 = arith.addf %21, %23 : vector<16x64xf32>
    %cst = arith.constant 0.000000e+00 : f32
    %25 = vector.broadcast %cst : f32 to vector<16x64xf32>
    %26 = arith.maximumf %24, %25 : vector<16x64xf32>
    %27 = arith.truncf %26 : vector<16x64xf32> to vector<16x64xbf16>
    %c0_9 = arith.constant 0 : index
    %c0_10 = arith.constant 0 : index
    %28 = vector.load %arg5[%c0_9, %c0_10] : memref<64x128xbf16, #tpu.memory_space<vmem>>, vector<64x128xbf16>
    %cst_11 = arith.constant dense<0.000000e+00> : vector<16x128xf32>
    %29 = tpu.matmul %27, %28, %cst_11 {dimension_numbers = #tpu.dot_dimension_numbers<[1], [0], [0], [1], [0, 0, 1, 1], [], []>} : vector<16x64xbf16>, vector<64x128xbf16>, vector<16x128xf32> -> vector<16x128xf32>
    %c0_12 = arith.constant 0 : index
    %c0_13 = arith.constant 0 : index
    %30 = vector.load %arg6[%c0_12, %c0_13] : memref<1x128xf32, #tpu.memory_space<vmem>>, vector<1x128xf32>
    %31 = vector.broadcast %30 : vector<1x128xf32> to vector<16x128xf32>
    %32 = arith.addf %29, %31 : vector<16x128xf32>
    %cst_14 = arith.constant 0.000000e+00 : f32
    %33 = vector.broadcast %cst_14 : f32 to vector<16x128xf32>
    %34 = arith.maximumf %32, %33 : vector<16x128xf32>
    %35 = arith.truncf %34 : vector<16x128xf32> to vector<16x128xbf16>
    %c0_15 = arith.constant 0 : index
    %c0_16 = arith.constant 0 : index
    %36 = vector.load %arg7[%c0_15, %c0_16] : memref<128x1024xbf16, #tpu.memory_space<vmem>>, vector<128x1024xbf16>
    %cst_17 = arith.constant dense<0.000000e+00> : vector<16x1024xf32>
    %37 = tpu.matmul %35, %36, %cst_17 {dimension_numbers = #tpu.dot_dimension_numbers<[1], [0], [0], [1], [0, 0, 1, 1], [], []>} : vector<16x128xbf16>, vector<128x1024xbf16>, vector<16x1024xf32> -> vector<16x1024xf32>
    %38 = vector.shape_cast %37 : vector<16x1024xf32> to vector<1x16x1024xf32>
    %cst_18 = arith.constant dense<0xFF800000> : vector<1x1024xf32>
    %39 = vector.multi_reduction <maximumf>, %38, %cst_18 [1] : vector<1x16x1024xf32> to vector<1x1024xf32>
    %c0_19 = arith.constant 0 : index
    %c0_20 = arith.constant 0 : index
    %c0_21 = arith.constant 0 : index
    %40 = vector.load %arg8[%c0_19, %c0_20, %c0_21] : memref<1x1x1024xf32, #tpu.memory_space<vmem>>, vector<1x1x1024xf32>
    %41 = vector.shape_cast %39 : vector<1x1024xf32> to vector<1x1x1024xf32>
    %42 = arith.maximumf %40, %41 : vector<1x1x1024xf32>
    %c0_22 = arith.constant 0 : index
    %c0_23 = arith.constant 0 : index
    %c0_24 = arith.constant 0 : index
    %43 = vector.load %arg8[%c0_22, %c0_23, %c0_24] : memref<1x1x1024xf32, #tpu.memory_space<vmem>>, vector<1x1x1024xf32>
    tpu.vector_store %arg8[%c0_22, %c0_23, %c0_24], %42 {strides = array<i32>} : memref<1x1x1024xf32, #tpu.memory_space<vmem>>, vector<1x1x1024xf32>,
    return
  }
  func.func @transform_0(%arg0: i32, %arg1: i32) -> (i32, i32, i32) {
    %c0_i32 = arith.constant 0 : i32
    %c0_i32_0 = arith.constant 0 : i32
    return %arg0, %arg1, %c0_i32 : i32, i32, i32
  }
  func.func @transform_1(%arg0: i32, %arg1: i32) -> (i32, i32) {
    %c0_i32 = arith.constant 0 : i32
    %c0_i32_0 = arith.constant 0 : i32
    %c0_i32_1 = arith.constant 0 : i32
    return %c0_i32, %c0_i32_0 : i32, i32
  }
  func.func @transform_2(%arg0: i32, %arg1: i32) -> (i32, i32) {
    %c0_i32 = arith.constant 0 : i32
    %c0_i32_0 = arith.constant 0 : i32
    %c0_i32_1 = arith.constant 0 : i32
    return %c0_i32, %c0_i32_0 : i32, i32
  }
  func.func @transform_3(%arg0: i32, %arg1: i32) -> (i32, i32) {
    %c0_i32 = arith.constant 0 : i32
    %c0_i32_0 = arith.constant 0 : i32
    %c0_i32_1 = arith.constant 0 : i32
    return %c0_i32, %c0_i32_0 : i32, i32
  }
  func.func @transform_4(%arg0: i32, %arg1: i32) -> (i32, i32) {
    %c0_i32 = arith.constant 0 : i32
    %c0_i32_0 = arith.constant 0 : i32
    %c0_i32_1 = arith.constant 0 : i32
    return %c0_i32, %c0_i32_0 : i32, i32
  }
  func.func @transform_5(%arg0: i32, %arg1: i32) -> (i32, i32) {
    %c0_i32 = arith.constant 0 : i32
    %c0_i32_0 = arith.constant 0 : i32
    %c0_i32_1 = arith.constant 0 : i32
    return %c0_i32, %c0_i32_0 : i32, i32
  }
  func.func @transform_6(%arg0: i32, %arg1: i32) -> (i32, i32, i32) {
    %c0_i32 = arith.constant 0 : i32
    %c0_i32_0 = arith.constant 0 : i32
    %c0_i32_1 = arith.constant 0 : i32
    return %arg0, %c0_i32, %c0_i32_0 : i32, i32, i32
  }
}

</mosaic_0001>

<bundles_post_ra>
// kernel: tpu_custom_call.1
= control target key start
LH: loop header
LB: loop body
LE: loop exit
PB: predicated region body
PF: predicated region fallthrough
CT: control target
= control target key end

     0   :  { %11 = vsyncpa [#allocation3], 0  ;;  %s1771_s0 = inlined_call_operand.vmem [shape: f32[2,16,3], index: 0, kind: input, shape index: {}]   ;;  %s1772_s1 = inlined_call_operand.vmem [shape: f32[3,64], index: 1, kind: input, shape index: {}]   ;;  %s1773_s2 = inlined_call_operand.vmem [shape: f32[1,64], index: 2, kind: input, shape index: {}]   ;;  %s1774_s3 = inlined_call_operand.vmem [shape: bf16[64,128], index: 3, kind: input, shape index: {}]   ;;  %s1775_s4 = inlined_call_operand.vmem [shape: f32[1,128], index: 4, kind: input, shape index: {}]   ;;  %s1776_s5 = inlined_call_operand.hbm [shape: bf16[128,1024], index: 5, kind: input, shape index: {}]   ;;  %s1777_s6 = inlined_call_operand.hbm [shape: f32[2,1,1024], index: 6, kind: output, shape index: {}]  }
   0x1   :  { %12 = vsyncpa [#allocation4], 0 }
   0x2   :  { %14 = vsyncpa [#allocation4 + $0x1], 0  ;;  %s1572_s21 = smov 0   ;;  %s1574_s22 = smov 0  }
   0x3   :  { %s1576_s23 = smov 0   ;;  %s1578_s24 = smov 0  }
   0x4   :  { %s1580_s25 = smov 0   ;;  %s1582_s26 = smov 0  }
   0x5 LB: > { %s1224_s27 = sadd.s32 4294967295, %s1525_s26   ;;  %s1225_s28 = sadd.s32 4294967294, %s1525_s26   ;;  %s1525_s26 = sphi %s1582_s26, %s20_s26   ;;  %s1521_s25 = sphi %s1580_s25, %s1795_s25   ;;  %s1517_s24 = sphi %s1578_s24, %s1794_s24   ;;  %s1513_s23 = sphi %s1576_s23, %s1793_s23   ;;  %s1509_s22 = sphi %s1574_s22, %s1792_s22   ;;  %s1505_s21 = sphi %s1572_s21, %s1791_s21  }
   0x6   : > { %s32_s29 = sadd.s32 1, %s1521_s25  ;;  %s172_s30 = sadd.s32 1, %s1513_s23 }
   0x7   : > { %p34_p0 = scmp.ge.s32.totalorder %s32_s29, 2  ;;  %p182_p1 = scmp.ne.s32.totalorder %s1513_s23, %s1509_s22 }
   0x8   : > { %p183_p2 = scmp.eq.s32.totalorder %s1224_s27, 1  ;;  %p188_p3 = scmp.ne.s32.totalorder %s1509_s22, %s1505_s21 }
   0x9   : > { %s1797_s29 = smov (%p34_p0, %s32_s29), 0  ;;  %p189_p5 = scmp.eq.s32.totalorder %s1225_s28, 1 }
   0xa   : > { %p1612_p4 = por %p183_p2, %p182_p1  ;;  %s169_s8 = ssub.s32 %s1521_s25, %s1797_s29 }
   0xb   : > { %p1226_p6 = scmp.ge.s32.totalorder %s1525_s26, 1  ;;  %p170_p7 = scmp.eq.s32.totalorder %s169_s8, 0 }
   0xc   : > { %s1782_s7 = scalar_select %p1612_p4, 1, 0 }
   0xd   : > { %p1619_p8 = por %p189_p5, %p188_p3  ;;  %p196_p9 = scmp.lt.s32.totalorder %s1525_s26, 3 }
   0xe   : > { %s1625_s10 = scalar_select %p170_p7, %s1513_s23, %s172_s30  }
   0xf   : > { %s1783_s9 = scalar_select %p1619_p8, 1, 0 }
  0x10   : > { %p1627_p10 = pnand %p1226_p6, %p196_p9  ;;  %p1631_p11 = scmp.eq.s32.totalorder %s1224_s27, 0 }
  0x11   : > { %s1527_s13 = smov [#allocation2]   ;;  %s1415_s18 = scalar_lea.hbm %s1776_s5, 8192 }
  0x12   : > { %s1784_s11 = scalar_select %p1627_p10, 1, 0 }
  0x13   : > { %s1785_s12 = scalar_select %p1631_p11, 1, 0 }
  0x14   : > { %p1338_p12 = pneg %p1627_p10  ;;  %s220_s14 = sshll.u32 %s1527_s13, 4  ;;  %s221_s14 = int_to_ptr.vmem [resolvable:$true] %s220_s14 }
  0x15   : > { %p1416_p0 = scmp.ne.s32.totalorder %s1776_s5, %s1415_s18  ;;  %p1422_p5 = scmp.lt.u32.totalorder %s1415_s18, %s1776_s5 }
  0x16   : > { %p1639_p13 = pnand %p1631_p11, %p1338_p12 }
  0x18   : > { %p1417_p1 = pneg %p1639_p13 }
  0x1a   : > { %p1418_p2 = pnand %p1417_p1, %p1416_p0 }
  0x1c   : > { %p1419_p3 = pneg %p1418_p2 }
  0x1e   : > { %p1424_p6 = pnand %p1422_p5, %p1419_p3 }
  0x20   : > { %1427 = shalt.err (!%p1424_p6)
}
  0x21   : > { %s1428_s30 = scalar_lea.vmem %s221_s14, 8192  ;;  %p1436_p8 = scmp.lt.s32.totalorder %s221_s14, %s221_s14 }
  0x22   : > { %p1429_p7 = scmp.ne.s32.totalorder %s221_s14, %s1428_s30  ;;  %p1437_p4 = scmp.lt.s32.totalorder %s1428_s30, %s1428_s30 }
  0x24   : > { %p1431_p9 = pnand %p1429_p7, %p1417_p1  ;;  %p1438_p11 = por %p1437_p4, %p1436_p8 }
  0x26   : > { %p1432_p12 = pneg %p1431_p9 }
  0x28   : > { %p1439_p10 = pnand %p1438_p11, %p1432_p12 }
  0x2a   : > { %1442 = shalt.err (!%p1439_p10)
}
  0x2b   : > { %s1528_s8 = smov 512   ;;  %s1529_s13 = smov 32  }
  0x2c   : > { %1341 = dma.hbm_to_vmem [thread:$0]  (!%p1639_p13), %s1776_s5, 8192, %s221_s14, [#allocation3], %s1528_s8, %s1528_s8, %s1529_s13  }
  0x2d   : > { %p1787_p0 = scmp.ne.s32.totalorder %s1784_s11, 0 }
  0x2e   : > { %p1788_p2 = scmp.ne.s32.totalorder (!%p1787_p0), %s1785_s12, 0 }
  0x2f   : > { %249 = sbr.rel (%p1787_p0) target bundleno = 714 (0x2ca), region = 44 }
  0x36   : > { %1496 = dma.done.wait (%p1788_p2), [#allocation3], 8192  }
  0x37   : > { %1498 = vsyncadd (%p1788_p2), [#allocation3], 4294959104  ;;  %p284_p4 = scmp.lt.s32.totalorder %s1517_s24, 1  ;;  %v1530_v0 = vmov 1   ;;  %v1531_v1 = vmov 0   ;;  %v1411_v4 = vld [vmem:[%s1774_s3] sm:$0xff]  }
  0x38   : > { %1408 = vset.pattern.permute.xlu1 %v1530_v0  ;;  %1407 = vset.pattern.permute.xlu0 %v1531_v1  ;;  %v1532_v5 = vmov 0.0   ;;  %v1412_v6 = vld [vmem:[%s1774_s3 + $0x8] sm:$0xff]   ;;  %v1533_v7 = vmov 2   ;;  %v1413_v8 = vld [vmem:[%s1774_s3 + $0x10] sm:$0xff]   ;;  %v1414_v9 = vld [vmem:[%s1774_s3 + $0x18] sm:$0xff]   ;;  %vm1534_vm0 = vmmov 0  }
  0x39   : > { %s285_s15 = scalar_select %p284_p4, %s1517_s24, 1  ;;  %867 = vmatprep.mubr.bf16.mxu1 %v1531_v1  ;;  %1320 = vmatprep.subr.bf16.mxu0 %v1532_v5  ;;  %v451_v10 = vld [vmem:[#allocation2] sm:$0xff]  ;;  %v1684_v12 = vld [vmem:[#allocation2 + $0x8] sm:$0xff]  ;;  %vm403_vm1 = vcmask 523264  }
  0x3a   : > { %1321 = vmatpush3.bf16.msra.mxu0 %v1411_v4  ;;  %1328 = vmatprep.mubr.msk.bf16.mxu0 %vm1534_vm0, %v1532_v5  ;;  %v455_v11 = vld [vmem:[#allocation2 + $0x20] sm:$0xff]  ;;  %v1686_v14 = vld [vmem:[#allocation2 + $0x28] sm:$0xff]  ;;  %s280_s30 = sand.u32 1, %s1509_s22   ;;  %s1314_s13 = sshll.u32 %s1517_s24, 7 }
  0x3b   : > { %s1313_s14 = sshll.u32 %s285_s15, 4  ;;  %1322 = vmatprep.subr.bf16.mxu0 %v1532_v5  ;;  %v1245_v13 = vcombine.high %v451_v10, %v455_v11  ;;  %v1244_v15 = vcombine.low %v451_v10, %v455_v11  ;;  %v459_v16 = vld [vmem:[#allocation2 + $0x40] sm:$0xff]  ;;  %v1246_v18 = vcombine.low %v1684_v12, %v1686_v14  ;;  %v1247_v19 = vcombine.high %v1684_v12, %v1686_v14  ;;  %v460_v60 = vld [vmem:[#allocation2 + $0x48] sm:$0xff]  ;;  %s1231_s8 = sshll.u32 %s280_s30, 3 }
  0x3c   : > { %s291_s19 = scalar_lea.vmem %s1771_s0, %s1313_s14  ;;  %v463_v17 = vld [vmem:[#allocation2 + $0x60] sm:$0xff]  ;;  %v464_v61 = vld [vmem:[#allocation2 + $0x68] sm:$0xff]  ;;  %s282_s16 = scalar_lea.vmem [#allocation5], %s1231_s8 }
  0x3d   : > { %v299_v2 = vld [vmem:[%s291_s19] sm:$0xff]  ;;  %v300_v3 = vld [vmem:[%s291_s19 + $0x8] sm:$0xff]  ;;  %v1253_v20 = vcombine.high %v459_v16, %v463_v17  ;;  %835 = vmatprep.subr.bf16.mxu1 %v1245_v13  ;;  %v1252_v21 = vcombine.low %v459_v16, %v463_v17  ;;  %s1139_s17 = sshll.u32 %s282_s16, 4  ;;  %s1724_s11 = scalar_lea.hbm %s1777_s6, %s1314_s13  ;;  %s1726_s17 = int_to_ptr.vmem [resolvable:$true] %s1139_s17 }
  0x3e   : > { %320 = vperm.xlu1 %1408, %v299_v2   ;;  %304 = vperm.xlu0 %1407, %v299_v2   ;;  %v467_v22 = vld [vmem:[#allocation2 + $0x80] sm:$0xff]  ;;  %v472_v4 = vld [vmem:[#allocation2 + $0xa8] sm:$0xff]  ;;  %s1125_s18 = scalar_lea.sflag [#allocation4], %s280_s30  ;;  %s1443_s19 = scalar_lea.vmem %s1726_s17, 128 }
  0x3f   : > { %1323 = vmatpush3.bf16.msra.mxu0 %v1412_v6  ;;  %836 = vmatpush1.bf16.msra.mxu1 %v1244_v15  ;;  %v471_v23 = vld [vmem:[#allocation2 + $0xa0] sm:$0xff]  ;;  %v484_v11 = vld [vmem:[#allocation2 + $0x108] sm:$0xff]  ;;  %p1444_p8 = scmp.ne.s32.totalorder %s1726_s17, %s1443_s19  ;;  %p1789_p10 = scmp.ne.s32.totalorder %s1782_s7, 0 }
  0x40   : > { %1324 = vmatprep.subr.bf16.mxu0 %v1532_v5  ;;  %837 = vmatprep.subr.bf16.mxu1 %v1253_v20  ;;  %v1261_v24 = vcombine.high %v467_v22, %v471_v23  ;;  %v1260_v25 = vcombine.low %v467_v22, %v471_v23  ;;  %v475_v26 = vld [vmem:[#allocation2 + $0xc0] sm:$0xff]  ;;  %v488_v13 = vld [vmem:[#allocation2 + $0x128] sm:$0xff]  ;;  %s1536_s24 = smov [#allocation5]  }
  0x41   : > { %v479_v27 = vld [vmem:[#allocation2 + $0xe0] sm:$0xff]  ;;  %v1279_v16 = vcombine.high %v484_v11, %v488_v13  ;;  %v492_v17 = vld [vmem:[#allocation2 + $0x148] sm:$0xff]  ;;  %v1278_v14 = vcombine.low %v484_v11, %v488_v13  ;;  %p1445_p11 = pnand %p1444_p8, %p1789_p10  ;;  %s1447_s12 = sshll.u32 %s1536_s24, 4  ;;  %s1448_s12 = int_to_ptr.vmem [resolvable:$false] %s1447_s12 }
  0x42   : > { %324 = vperm.xlu1 %1408, %v300_v3   ;;  %309 = vperm.xlu0 %1407, %v300_v3   ;;  %v1269_v28 = vcombine.high %v475_v26, %v479_v27  ;;  %v1268_v29 = vcombine.low %v475_v26, %v479_v27  ;;  %v483_v30 = vld [vmem:[#allocation2 + $0x100] sm:$0xff]  ;;  %v496_v12 = vld [vmem:[#allocation2 + $0x168] sm:$0xff]  ;;  %s1449_s20 = scalar_lea.vmem %s1448_s12, 256  ;;  %p1450_p1 = scmp.lt.s32.totalorder %s1726_s17, %s1448_s12 }
  0x43   : > { %1325 = vmatpush3.bf16.msra.mxu0 %v1413_v8  ;;  %838 = vmatpush1.bf16.msra.mxu1 %v1252_v21  ;;  %v487_v31 = vld [vmem:[#allocation2 + $0x120] sm:$0xff]  ;;  %v480_v8 = vld [vmem:[#allocation2 + $0xe8] sm:$0xff]  ;;  %p1446_p13 = pneg %p1445_p11  ;;  %p1451_p3 = scmp.lt.s32.totalorder %s1449_s20, %s1443_s19 }
  0x44   : > { %1326 = vmatprep.subr.bf16.mxu0 %v1532_v5  ;;  %839 = vmatprep.subr.bf16.mxu1 %v1261_v24  ;;  %v1277_v32 = vcombine.high %v483_v30, %v487_v31  ;;  %v1276_v33 = vcombine.low %v483_v30, %v487_v31  ;;  %v491_v34 = vld [vmem:[#allocation2 + $0x140] sm:$0xff]  ;;  %v1254_v5 = vcombine.low %v460_v60, %v464_v61  ;;  %v500_v22 = vld [vmem:[#allocation2 + $0x188] sm:$0xff] }
  0x45   : > { %v495_v35 = vld [vmem:[#allocation2 + $0x160] sm:$0xff]  ;;  %v504_v24 = vld [vmem:[#allocation2 + $0x1a8] sm:$0xff]  ;;  %p1452_p5 = por %p1451_p3, %p1450_p1 }
  0x46   : > { %1410 = vset.pattern.permute.xlu1 %v1533_v7  ;;  %1409 = vset.pattern.permute.xlu0 %v1533_v7  ;;  %v1285_v36 = vcombine.high %v491_v34, %v495_v35  ;;  %v1284_v37 = vcombine.low %v491_v34, %v495_v35  ;;  %v1235_v40 = vld [vmem:[%s1772_s1 + $0x1] ss:$0 sm:$0xff]  ;;  %v1234_v41 = vld [vmem:[%s1772_s1] ss:$0 sm:$0xff]  ;;  %v1236_v48 = vld [vmem:[%s1772_s1 + $0x2] ss:$0 sm:$0xff]  ;;  %v1295_v26 = vcombine.high %v500_v22, %v504_v24 }
  0x47   : > { %341 = vperm.xlu1 %1410, %v300_v3   ;;  %337 = vperm.xlu0 %1409, %v299_v2   ;;  %v1237_v55 = vld [vmem:[%s1773_s2] ss:$0 sm:$0xff]  ;;  %v1255_v2 = vcombine.high %v460_v60, %v464_v61  ;;  %v468_v3 = vld [vmem:[#allocation2 + $0x88] sm:$0xff]  ;;  %v469_v60 = vld [vmem:[#allocation2 + $0x90] sm:$0xff]  ;;  %p1453_p6 = pnand %p1452_p5, %p1446_p13 }
  0x48   : > { %1327 = vmatpush3.bf16.msra.mxu0 %v1414_v9  ;;  %840 = vmatpush1.bf16.msra.mxu1 %v1260_v25  ;;  %v1263_v6 = vcombine.high %v468_v3, %v472_v4  ;;  %v476_v7 = vld [vmem:[#allocation2 + $0xc8] sm:$0xff]  ;;  %v1262_v9 = vcombine.low %v468_v3, %v472_v4  ;;  %v499_v20 = vld [vmem:[#allocation2 + $0x180] sm:$0xff]  ;;  %v1294_v25 = vcombine.low %v500_v22, %v504_v24  ;;  %v473_v61 = vld [vmem:[#allocation2 + $0xb0] sm:$0xff] }
  0x49   : > { %878 = vmatprep.subr.bf16.mxu0 %v1247_v19  ;;  %841 = vmatprep.subr.bf16.mxu1 %v1269_v28  ;;  %v1271_v10 = vcombine.high %v476_v7, %v480_v8  ;;  %v1270_v15 = vcombine.low %v476_v7, %v480_v8  ;;  %v1286_v19 = vcombine.low %v492_v17, %v496_v12  ;;  %v503_v21 = vld [vmem:[#allocation2 + $0x1a0] sm:$0xff]  ;;  %v508_v30 = vld [vmem:[#allocation2 + $0x1c8] sm:$0xff]  ;;  %v478_v7 = vld [vmem:[#allocation2 + $0xd8] sm:$0xff] }
  0x4a   : > { %v1293_v23 = vcombine.high %v499_v20, %v503_v21  ;;  %v1292_v27 = vcombine.low %v499_v20, %v503_v21  ;;  %v507_v28 = vld [vmem:[#allocation2 + $0x1c0] sm:$0xff]  ;;  %v1265_v3 = vcombine.high %v469_v60, %v473_v61  ;;  %v482_v8 = vld [vmem:[#allocation2 + $0xf8] sm:$0xff]  ;;  %v493_v20 = vld [vmem:[#allocation2 + $0x150] sm:$0xff] }
  0x4b   : > { %v1275_v13 = vcombine.high %v478_v7, %v482_v8  ;;  %v497_v21 = vld [vmem:[#allocation2 + $0x170] sm:$0xff]  ;;  %v494_v22 = vld [vmem:[#allocation2 + $0x158] sm:$0xff] }
  0x4c   : > { %842 = vmatpush1.bf16.msra.mxu1 %v1268_v29  ;;  %v511_v29 = vld [vmem:[#allocation2 + $0x1e0] sm:$0xff] }
  0x4d   : > { %843 = vmatprep.subr.bf16.mxu1 %v1277_v32  ;;  %v1301_v31 = vcombine.high %v507_v28, %v511_v29  ;;  %v512_v32 = vld [vmem:[#allocation2 + $0x1e8] sm:$0xff]  ;;  %v1300_v35 = vcombine.low %v507_v28, %v511_v29  ;;  %v501_v28 = vld [vmem:[#allocation2 + $0x190] sm:$0xff] }
  0x4e   : > { %v1303_v34 = vcombine.high %v508_v30, %v512_v32  ;;  %v505_v29 = vld [vmem:[#allocation2 + $0x1b0] sm:$0xff] }
  0x50   : > { %844 = vmatpush1.bf16.msra.mxu1 %v1276_v33  ;;  %v1302_v33 = vcombine.low %v508_v30, %v512_v32  ;;  %v502_v30 = vld [vmem:[#allocation2 + $0x198] sm:$0xff]  ;;  %v1288_v32 = vcombine.low %v493_v20, %v497_v21 }
  0x51   : > { %845 = vmatprep.subr.bf16.mxu1 %v1285_v36  ;;  %v453_v36 = vld [vmem:[#allocation2 + $0x10] sm:$0xff] }
  0x54   : > { %846 = vmatpush1.bf16.msra.mxu1 %v1284_v37  ;;  %v457_v37 = vld [vmem:[#allocation2 + $0x30] sm:$0xff] }
  0x55   : > { %847 = vmatprep.subr.bf16.mxu1 %v1293_v23  ;;  %v498_v23 = vld [vmem:[#allocation2 + $0x178] sm:$0xff] }
  0x58   : > { %848 = vmatpush1.bf16.msra.mxu1 %v1292_v27  ;;  %v1291_v27 = vcombine.high %v494_v22, %v498_v23 }
  0x59   : > { %849 = vmatprep.subr.bf16.mxu1 %v1301_v31  ;;  %v506_v31 = vld [vmem:[#allocation2 + $0x1b8] sm:$0xff] }
  0x5c   : > { %850 = vmatpush1.bf16.msra.mxu1 %v1300_v35  ;;  %v1299_v35 = vcombine.high %v502_v30, %v506_v31 }
  0xbd   : > { %v321_v38 = vpop.permute.xlu1 %320  ;;  %v305_v39 = vpop.permute.xlu0 %304 }
  0xbe   : > { %v331_v44 = vmul.f32 %v1235_v40, %v321_v38  ;;  %v316_v45 = vmul.f32 %v1234_v41, %v305_v39  ;;  %v454_v38 = vld [vmem:[#allocation2 + $0x18] sm:$0xff]  ;;  %v1249_v39 = vcombine.high %v453_v36, %v457_v37 }
  0xc0   : > { %v333_v51 = vadd.f32 %v331_v44, %v316_v45  ;;  %921 = vmatprep.subr.bf16.mxu1 %v1249_v39  ;;  %v1238_v44 = vld [vmem:[%s1775_s4] ss:$0 sm:$0xff]  ;;  %v514_v39 = vld [vmem:[#allocation2 + $0x1f8] sm:$0xff] }
  0xc1   : > { %v325_v42 = vpop.permute.xlu1 %324  ;;  %v310_v43 = vpop.permute.xlu0 %309 }
  0xc2   : > { %v332_v46 = vmul.f32 %v1235_v40, %v325_v42  ;;  %v317_v47 = vmul.f32 %v1234_v41, %v310_v43  ;;  %v458_v40 = vld [vmem:[#allocation2 + $0x38] sm:$0xff]  ;;  %v1248_v41 = vcombine.low %v453_v36, %v457_v37  ;;  %v509_v36 = vld [vmem:[#allocation2 + $0x1d0] sm:$0xff] }
  0xc3   : > { %v1250_v42 = vcombine.low %v454_v38, %v458_v40  ;;  %v1251_v43 = vcombine.high %v454_v38, %v458_v40  ;;  %v513_v37 = vld [vmem:[#allocation2 + $0x1f0] sm:$0xff]  ;;  %v510_v38 = vld [vmem:[#allocation2 + $0x1d8] sm:$0xff]  ;;  %v1296_v40 = vcombine.low %v501_v28, %v505_v29 }
  0xc4   : > { %v334_v52 = vadd.f32 %v332_v46, %v317_v47 }
  0xc6   : > { %v342_v49 = vpop.permute.xlu1 %341  ;;  %v338_v50 = vpop.permute.xlu0 %337 }
  0xc7   : > { %v349_v53 = vmul.f32 %v1236_v48, %v342_v49  ;;  %v348_v54 = vmul.f32 %v1236_v48, %v338_v50 }
  0xc9   : > { %v351_v56 = vadd.f32 %v349_v53, %v334_v52  ;;  %v350_v57 = vadd.f32 %v348_v54, %v333_v51  ;;  %v461_v51 = vld [vmem:[#allocation2 + $0x50] sm:$0xff]  ;;  %v462_v53 = vld [vmem:[#allocation2 + $0x58] sm:$0xff] }
  0xca   : > { %v465_v52 = vld [vmem:[#allocation2 + $0x70] sm:$0xff]  ;;  %v466_v54 = vld [vmem:[#allocation2 + $0x78] sm:$0xff] }
  0xcb   : > { %v360_v58 = vadd.f32 %v1237_v55, %v351_v56  ;;  %v359_v59 = vadd.f32 %v1237_v55, %v350_v57 }
  0xcd   : > { %v362_v62 = vmax.f32 %v360_v58, 0.0  ;;  %v361_v63 = vmax.f32 %v359_v59, 0.0  ;;  %v1257_v58 = vcombine.high %v461_v51, %v465_v52  ;;  %v1259_v59 = vcombine.high %v462_v53, %v466_v54 }
  0xcf   : > { %v363_v0 = vpack.c.bf16 %v362_v62, %v361_v63  ;;  %v470_v62 = vld [vmem:[#allocation2 + $0x98] sm:$0xff] }
  0xd0   : > { %v474_v63 = vld [vmem:[#allocation2 + $0xb8] sm:$0xff] }
  0xd1   : > { %1329 = vmatmul.mubr.msk.bf16.vlgmr.msra.gmra.mrb[0].mxu0 %vm403_vm1, %v363_v0  ;;  %v1256_v0 = vcombine.low %v461_v51, %v465_v52  ;;  %v1267_v4 = vcombine.high %v470_v62, %v474_v63 }
  0xd2   : > { %879 = vmatpush1.bf16.msra.mxu0 %v1246_v18  ;;  %910 = vmatprep.mubr.bf16.mxu0 %v1531_v1  ;;  %v1287_v18 = vcombine.high %v492_v17, %v496_v12  ;;  %v486_v17 = vld [vmem:[#allocation2 + $0x118] sm:$0xff] }
  0xd3   : > { %880 = vmatprep.subr.bf16.mxu0 %v1255_v2  ;;  %v1258_v2 = vcombine.low %v462_v53, %v466_v54  ;;  %v490_v12 = vld [vmem:[#allocation2 + $0x138] sm:$0xff] }
  0xd6   : > { %881 = vmatpush1.bf16.msra.mxu0 %v1254_v5  ;;  %v477_v5 = vld [vmem:[#allocation2 + $0xd0] sm:$0xff] }
  0xd7   : > { %882 = vmatprep.subr.bf16.mxu0 %v1263_v6  ;;  %v481_v6 = vld [vmem:[#allocation2 + $0xf0] sm:$0xff] }
  0xd8   : > { %v1273_v11 = vcombine.high %v477_v5, %v481_v6 }
  0xda   : > { %883 = vmatpush1.bf16.msra.mxu0 %v1262_v9  ;;  %v1264_v9 = vcombine.low %v469_v60, %v473_v61 }
  0xdb   : > { %884 = vmatprep.subr.bf16.mxu0 %v1271_v10  ;;  %v1266_v10 = vcombine.low %v470_v62, %v474_v63 }
  0xde   : > { %885 = vmatpush1.bf16.msra.mxu0 %v1270_v15  ;;  %v485_v15 = vld [vmem:[#allocation2 + $0x110] sm:$0xff] }
  0xdf   : > { %886 = vmatprep.subr.bf16.mxu0 %v1279_v16  ;;  %v489_v16 = vld [vmem:[#allocation2 + $0x130] sm:$0xff] }
  0xe0   : > { %v1280_v24 = vcombine.low %v485_v15, %v489_v16 }
  0xe2   : > { %887 = vmatpush1.bf16.msra.mxu0 %v1278_v14  ;;  %v1272_v14 = vcombine.low %v477_v5, %v481_v6 }
  0xe3   : > { %888 = vmatprep.subr.bf16.mxu0 %v1287_v18  ;;  %v1274_v18 = vcombine.low %v478_v7, %v482_v8 }
  0xe6   : > { %889 = vmatpush1.bf16.msra.mxu0 %v1286_v19  ;;  %v1281_v19 = vcombine.high %v485_v15, %v489_v16 }
  0xe7   : > { %890 = vmatprep.subr.bf16.mxu0 %v1295_v26  ;;  %v1289_v26 = vcombine.high %v493_v20, %v497_v21 }
  0xea   : > { %891 = vmatpush1.bf16.msra.mxu0 %v1294_v25  ;;  %v1282_v25 = vcombine.low %v486_v17, %v490_v12 }
  0xeb   : > { %892 = vmatprep.subr.bf16.mxu0 %v1303_v34  ;;  %v1297_v34 = vcombine.high %v501_v28, %v505_v29 }
  0xee   : > { %893 = vmatpush1.bf16.msra.mxu0 %v1302_v33  ;;  %v1290_v33 = vcombine.low %v494_v22, %v498_v23 }
  0xef   : > { %964 = vmatprep.subr.bf16.mxu0 %v1251_v43  ;;  %v1307_v43 = vcombine.high %v510_v38, %v514_v39 }
 0x1a4   : > { %v441_v45 = vpop.f32.mrb[0].mxu0 }
 0x1a5   : > { %v442_v46 = vadd.f32 %v1238_v44, %v441_v45  ;;  %v1330_v47 = vpop.f32.mrb[1].mxu0  ;;  %v1306_v45 = vcombine.low %v510_v38, %v514_v39 }
 0x1a6   : > { %v444_v48 = vpop.f32.mrb[2].mxu0 }
 0x1a7   : > { %v445_v49 = vadd.f32 %v1238_v44, %v444_v48  ;;  %v1331_v50 = vpop.f32.mrb[3].mxu0  ;;  %v448_v55 = vmax.f32 %v442_v46, 0.0  ;;  %v1304_v44 = vcombine.low %v509_v36, %v513_v37 }
 0x1a9   : > { %v449_v56 = vmax.f32 %v445_v49, 0.0 }
 0x1ab   : > { %v1711_v57 = vpack.c.bf16 %v449_v56, %v448_v55 }
 0x1ad   : > { %868 = vmatmul.mubr.bf16.vlgmr.msra.gmra.mrb[0].mxu1 %v1711_v57  ;;  %911 = vmatmul.mubr.bf16.vlgmr.msra.gmra.mrb[4].mxu0 %v1711_v57 }
 0x1ae   : > { %922 = vmatpush1.bf16.msra.mxu1 %v1248_v41  ;;  %965 = vmatpush1.bf16.msra.mxu0 %v1250_v42  ;;  %v1298_v41 = vcombine.low %v502_v30, %v506_v31  ;;  %v1305_v42 = vcombine.high %v509_v36, %v513_v37 }
 0x1af   : > { %923 = vmatprep.subr.bf16.mxu1 %v1257_v58  ;;  %966 = vmatprep.subr.bf16.mxu0 %v1259_v59 }
 0x1b0   : > { %953 = vmatprep.mubr.bf16.mxu1 %v1531_v1  ;;  %996 = vmatprep.mubr.bf16.mxu0 %v1531_v1  ;;  %v1283_v1 = vcombine.high %v486_v17, %v490_v12 }
 0x1b2   : > { %924 = vmatpush1.bf16.msra.mxu1 %v1256_v0  ;;  %967 = vmatpush1.bf16.msra.mxu0 %v1258_v2 }
 0x1b3   : > { %925 = vmatprep.subr.bf16.mxu1 %v1265_v3  ;;  %968 = vmatprep.subr.bf16.mxu0 %v1267_v4  ;;  %v1079_v4 = vlaneseq }
 0x1b5   : > { %v1080_v16 = vshrl.u32 %v1079_v4, 7 }
 0x1b6   : > { %926 = vmatpush1.bf16.msra.mxu1 %v1264_v9  ;;  %969 = vmatpush1.bf16.msra.mxu0 %v1266_v10 }
 0x1b7   : > { %927 = vmatprep.subr.bf16.mxu1 %v1273_v11  ;;  %970 = vmatprep.subr.bf16.mxu0 %v1275_v13 }
 0x1ba   : > { %928 = vmatpush1.bf16.msra.mxu1 %v1272_v14  ;;  %971 = vmatpush1.bf16.msra.mxu0 %v1274_v18 }
 0x1bb   : > { %929 = vmatprep.subr.bf16.mxu1 %v1281_v19  ;;  %972 = vmatprep.subr.bf16.mxu0 %v1283_v1 }
 0x1be   : > { %930 = vmatpush1.bf16.msra.mxu1 %v1280_v24  ;;  %973 = vmatpush1.bf16.msra.mxu0 %v1282_v25 }
 0x1bf   : > { %931 = vmatprep.subr.bf16.mxu1 %v1289_v26  ;;  %974 = vmatprep.subr.bf16.mxu0 %v1291_v27 }
 0x1c2   : > { %932 = vmatpush1.bf16.msra.mxu1 %v1288_v32  ;;  %975 = vmatpush1.bf16.msra.mxu0 %v1290_v33 }
 0x1c3   : > { %933 = vmatprep.subr.bf16.mxu1 %v1297_v34  ;;  %976 = vmatprep.subr.bf16.mxu0 %v1299_v35 }
 0x1c6   : > { %934 = vmatpush1.bf16.msra.mxu1 %v1296_v40  ;;  %977 = vmatpush1.bf16.msra.mxu0 %v1298_v41 }
 0x1c7   : > { %935 = vmatprep.subr.bf16.mxu1 %v1305_v42  ;;  %978 = vmatprep.subr.bf16.mxu0 %v1307_v43 }
 0x1ca   : > { %936 = vmatpush1.bf16.msra.mxu1 %v1304_v44  ;;  %979 = vmatpush1.bf16.msra.mxu0 %v1306_v45 }
 0x1cd   : > { %954 = vmatmul.mubr.bf16.vlgmr.msra.gmra.mrb[4].mxu1 %v1711_v57  ;;  %997 = vmatmul.mubr.bf16.vlgmr.msra.gmra.mrb[8].mxu0 %v1711_v57  ;;  %v1535_v57 = vmov 1966171168  }
 0x1ce   : > { %v1077_v3 = vunpack.c.l.s4 %v1535_v57 }
 0x1d0   : > { %v1078_v15 = vunpack.c.0.s8 %v1077_v3 }
 0x1d2   : > { %v1081_v22 = vsub.s32 %v1078_v15, %v1080_v16 }
 0x280   : > { %v869_v46 = vpop.f32.mrb[0].mxu1  ;;  %v912_v47 = vpop.f32.mrb[4].mxu0 }
 0x281   : > { %v871_v48 = vpop.f32.mrb[1].mxu1  ;;  %v914_v49 = vpop.f32.mrb[5].mxu0 }
 0x282   : > { %v873_v50 = vpop.f32.mrb[2].mxu1  ;;  %v916_v51 = vpop.f32.mrb[6].mxu0 }
 0x283   : > { %v1007_v52 = vmax.f32 %v869_v46, %v873_v50  ;;  %v1021_v53 = vmax.f32 %v912_v47, %v916_v51  ;;  %v875_v54 = vpop.f32.mrb[3].mxu1  ;;  %v918_v55 = vpop.f32.mrb[7].mxu0 }
 0x284   : > { %v1014_v56 = vmax.f32 %v871_v48, %v875_v54  ;;  %v1028_v58 = vmax.f32 %v914_v49, %v918_v55 }
 0x285   : > { %v1008_v59 = vrot.slane %v1007_v52, 4  ;;  %v1022_v60 = vrot.slane %v1021_v53, 4 }
 0x286   : > { %v1015_v61 = vrot.slane %v1014_v56, 4  ;;  %v1029_v62 = vrot.slane %v1028_v58, 4 }
 0x287   : > { %v1009_v63 = vmax.f32 %v1007_v52, %v1008_v59  ;;  %v1023_v0 = vmax.f32 %v1021_v53, %v1022_v60 }
 0x288   : > { %v1016_v2 = vmax.f32 %v1014_v56, %v1015_v61  ;;  %v1030_v5 = vmax.f32 %v1028_v58, %v1029_v62 }
 0x289   : > { %v1010_v6 = vrot.slane %v1009_v63, 2  ;;  %v1024_v7 = vrot.slane %v1023_v0, 2 }
 0x28a   : > { %v1017_v8 = vrot.slane %v1016_v2, 2  ;;  %v1031_v9 = vrot.slane %v1030_v5, 2 }
 0x28b   : > { %v1011_v10 = vmax.f32 %v1009_v63, %v1010_v6  ;;  %v1025_v11 = vmax.f32 %v1023_v0, %v1024_v7 }
 0x28c   : > { %v1018_v13 = vmax.f32 %v1016_v2, %v1017_v8  ;;  %v1032_v17 = vmax.f32 %v1030_v5, %v1031_v9 }
 0x28d   : > { %v1012_v12 = vrot.slane %v1011_v10, 1  ;;  %v1026_v14 = vrot.slane %v1025_v11, 1 }
 0x28e   : > { %v1019_v18 = vrot.slane %v1018_v13, 1  ;;  %v1033_v19 = vrot.slane %v1032_v17, 1 }
 0x28f   : > { %v1013_v1 = vmax.f32 %v1011_v10, %v1012_v12  ;;  %v1027_v20 = vmax.f32 %v1025_v11, %v1026_v14 }
 0x290   : > { %v1020_v21 = vmax.f32 %v1018_v13, %v1019_v18  ;;  %v1034_v23 = vmax.f32 %v1032_v17, %v1033_v19 }
 0x292   : > { %v1072_v24 = vcombine.low %v1013_v1, %v1020_v21  ;;  %v1073_v25 = vcombine.low %v1027_v20, %v1034_v23 }
 0x294   : > { %v1082_v26 = vrot.slane %v1072_v24, %v1081_v22  ;;  %v1089_v27 = vrot.slane %v1073_v25, %v1081_v22 }
 0x296   : > { %v1104_v28 = vcombine.low %v1082_v26, %v1089_v27 }
 0x298   : > { %v1112_v7 = vrot.slane %v1104_v28, %v1081_v22 }
 0x2a0   : > { %v955_v29 = vpop.f32.mrb[4].mxu1  ;;  %v998_v30 = vpop.f32.mrb[8].mxu0 }
 0x2a1   : > { %v957_v31 = vpop.f32.mrb[5].mxu1  ;;  %v1000_v32 = vpop.f32.mrb[9].mxu0 }
 0x2a2   : > { %v959_v33 = vpop.f32.mrb[6].mxu1  ;;  %v1002_v34 = vpop.f32.mrb[10].mxu0 }
 0x2a3   : > { %v1035_v35 = vmax.f32 %v955_v29, %v959_v33  ;;  %v1049_v36 = vmax.f32 %v998_v30, %v1002_v34  ;;  %v961_v37 = vpop.f32.mrb[7].mxu1  ;;  %v1004_v38 = vpop.f32.mrb[11].mxu0 }
 0x2a4   : > { %v1042_v39 = vmax.f32 %v957_v31, %v961_v37  ;;  %v1056_v40 = vmax.f32 %v1000_v32, %v1004_v38 }
 0x2a5   : > { %v1036_v41 = vrot.slane %v1035_v35, 4  ;;  %v1050_v42 = vrot.slane %v1049_v36, 4 }
 0x2a6   : > { %v1043_v43 = vrot.slane %v1042_v39, 4  ;;  %v1057_v44 = vrot.slane %v1056_v40, 4 }
 0x2a7   : > { %v1037_v45 = vmax.f32 %v1035_v35, %v1036_v41  ;;  %v1051_v46 = vmax.f32 %v1049_v36, %v1050_v42 }
 0x2a8   : > { %v1044_v47 = vmax.f32 %v1042_v39, %v1043_v43  ;;  %v1058_v48 = vmax.f32 %v1056_v40, %v1057_v44 }
 0x2a9   : > { %v1038_v49 = vrot.slane %v1037_v45, 2  ;;  %v1052_v50 = vrot.slane %v1051_v46, 2 }
 0x2aa   : > { %v1045_v51 = vrot.slane %v1044_v47, 2  ;;  %v1059_v52 = vrot.slane %v1058_v48, 2 }
 0x2ab   : > { %v1039_v53 = vmax.f32 %v1037_v45, %v1038_v49  ;;  %v1053_v54 = vmax.f32 %v1051_v46, %v1052_v50 }
 0x2ac   : > { %v1046_v55 = vmax.f32 %v1044_v47, %v1045_v51  ;;  %v1060_v56 = vmax.f32 %v1058_v48, %v1059_v52 }
 0x2ad   : > { %v1040_v58 = vrot.slane %v1039_v53, 1  ;;  %v1054_v59 = vrot.slane %v1053_v54, 1 }
 0x2ae   : > { %v1047_v60 = vrot.slane %v1046_v55, 1  ;;  %v1061_v61 = vrot.slane %v1060_v56, 1 }
 0x2af   : > { %v1041_v62 = vmax.f32 %v1039_v53, %v1040_v58  ;;  %v1055_v63 = vmax.f32 %v1053_v54, %v1054_v59 }
 0x2b0   : > { %v1048_v0 = vmax.f32 %v1046_v55, %v1047_v60  ;;  %v1062_v2 = vmax.f32 %v1060_v56, %v1061_v61 }
 0x2b2   : > { %v1074_v57 = vcombine.low %v1041_v62, %v1048_v0  ;;  %v1075_v3 = vcombine.low %v1055_v63, %v1062_v2 }
 0x2b4   : > { %v1096_v4 = vrot.slane %v1074_v57, %v1081_v22  ;;  %v1103_v5 = vrot.slane %v1075_v3, %v1081_v22 }
 0x2b6   : > { %v1105_v6 = vcombine.low %v1096_v4, %v1103_v5 }
 0x2b8   : > { %v1119_v8 = vrot.slane %v1105_v6, %v1081_v22 }
 0x2ba   : > { %v1120_v9 = vcombine.low %v1112_v7, %v1119_v8 }
 0x2bc   : > { %1123 = vst [vmem:[%s282_s16] sm:$0xff] %v1120_v9 }
 0x2bd   : > { %1456 = shalt.err (!%p1453_p6)
}
 0x2be   : > { %s1457_s27 = scalar_lea.hbm %s1724_s11, 128  ;;  %s1461_s8 = scalar_lea.hbm %s1777_s6, 256 }
 0x2bf   : > { %p1458_p7 = scmp.ne.s32.totalorder %s1724_s11, %s1457_s27  ;;  %p1462_p0 = scmp.lt.u32.totalorder %s1724_s11, %s1777_s6 }
 0x2c0   : > { %p1463_p2 = scmp.lt.u32.totalorder %s1461_s8, %s1457_s27  ;;  %p1465_p8 = scmp.lt.u32.totalorder %s1457_s27, %s1724_s11 }
 0x2c1   : > { %p1459_p9 = pnand %p1458_p7, %p1789_p10 }
 0x2c2   : > { %p1464_p4 = por %p1463_p2, %p1462_p0 }
 0x2c3   : > { %p1460_p12 = pneg %p1459_p9 }
 0x2c4   : > { %p1466_p11 = por %p1465_p8, %p1464_p4 }
 0x2c6   : > { %p1467_p13 = pnand %p1466_p11, %p1460_p12 }
 0x2c8   : > { %1470 = shalt.err (!%p1467_p13)
}
 0x2c9   : > { %1336 = dma.vmem_to_hbm [thread:$0]  (%p1789_p10), %s1726_s17, 128, %s1724_s11, %s1125_s18  }
 0x2ca PF: > { %p1348_p1 = scmp.ge.s32.totalorder %s1525_s26, 2  ;;  %s1151_s15 = sand.u32 1, %s1505_s21  }
 0x2cb   : > { %p1790_p3 = scmp.ne.s32.totalorder %s1783_s9, 0  ;;  %s1152_s14 = scalar_lea.sflag [#allocation4], %s1151_s15 }
 0x2cd   : > { %p1343_p5 = pnand %p1348_p1, %p1790_p3 }
 0x2cf   : > { %1500 = dma.done.wait (!%p1343_p5), %s1152_s14, 128  }
 0x2d0   : > { %1502 = vsyncadd (!%p1343_p5), %s1152_s14, 4294967168  ;;  %s20_s26 = sadd.s32 1, %s1525_s26   ;;  %s1791_s21 = smov %s1509_s22 }
 0x2d1   : > { %p17_p6 = scmp.ge.s32.totalorder %s20_s26, 4   ;;  %s1792_s22 = smov %s1513_s23 }
 0x2d2   : > { %s1793_s23 = smov %s1625_s10  ;;  %s1794_s24 = smov %s1521_s25 }
 0x2d3   : > { %s1795_s25 = smov %s1797_s29  ;;  %19 = sbr.rel (!%p17_p6) target bundleno = 5 (0x5), region = 88 }
 0x2da   :  { %1157 = vsyncpa [#allocation3], 1 }
 0x2db   :  { %1159 = vsyncpa [#allocation3 + $0x1], 1 }
 0x2dc   :  { %1160 = vsyncpa [#allocation4], 1 }
 0x2dd   :  { %1162 = vsyncpa [#allocation4 + $0x1], 1 }

</bundles_post_ra>
